<compile_context>
chip_gen: v7x
topology: tpu7x:2x2x1
jax: 0.10.0
libtpu: 0.0.40
codegen_flags: <defaults>
</compile_context>

<pallas_src>
import jax
import jax.numpy as jnp
from jax.experimental import pallas as pl
from jax.experimental.pallas import tpu as pltpu


_LANE = 128


def _round_up(x, m):
    return ((x + m - 1) // m) * m


def patch_decoder_kernel(coord_h1t_ref,   # VMEM [H1, TV]  ((coords @ W1[F:] + b1)^T tile)
                         feat_h1_ref,     # VMEM [N, H1]   (feature @ W1[:F], tile-invariant)
                         w2t_ref,         # VMEM [H2, H1]
                         b2_ref,          # VMEM [H2, 1]
                         w3t_ref,         # VMEM [C, H2]
                         b3_ref,          # VMEM [C, 1]
                         o_ref):          # VMEM [N, C, TV]  (lane-dense output)
    n, c, tv = o_ref.shape
    h2_dim, h1_dim = w2t_ref.shape

    # ---- Layer 1: broadcast-add of the precomputed halves + ReLU ----------
    # feat_h1 [N, H1] broadcast along lanes, coord_h1^T [H1, TV] broadcast
    # along N.  Result keeps TV on the lane axis (dense VPU work).
    h1t = jnp.maximum(
        feat_h1_ref[...][:, :, None] + coord_h1t_ref[...][None, :, :], 0.0
    )                                                            # [N, H1, TV]

    # ---- Layer 2: batched (over N) matmul, TV stays on lanes --------------
    w2t_b = jnp.broadcast_to(w2t_ref[...][None], (n, h2_dim, h1_dim))
    h2t = jnp.einsum('nkh,nhv->nkv', w2t_b, h1t,
                     preferred_element_type=jnp.float32)         # [N, H2, TV]
    h2t = jnp.maximum(h2t + b2_ref[...][None, :, :], 0.0)

    # ---- Layer 3 -----------------------------------------------------------
    w3t_b = jnp.broadcast_to(w3t_ref[...][None], (n, c, h2_dim))
    out_t = jnp.einsum('nch,nhv->ncv', w3t_b, h2t,
                       preferred_element_type=jnp.float32)       # [N, C, TV]
    out_t = out_t + b3_ref[...][None, :, :]

    # Lane-dense store: last dim is TV (multiple of 128).
    o_ref[...] = out_t.astype(o_ref.dtype)


def _pick_tile_v(tile_v, V, N, H1, H2):
    """128-aligned lane tile, capped by a rough (v7x-safe) VMEM budget."""
    tv = _round_up(max(tile_v, _LANE), _LANE)
    tv = min(tv, _round_up(V, _LANE))
    # f32 bytes per coordinate column: h1t + h2t + double-buffered out tile
    # (C padded to 8 sublanes) + double-buffered coord_h1t tile.
    per_v = 4 * (N * H1 + N * H2 + 2 * N * 8 + 2 * H1)
    budget = 24 * 1024 * 1024
    cap = max(_LANE, (budget // per_v) // _LANE * _LANE)
    return min(tv, cap)


def patch_decoder(feature, coords, params, tile_v=2048):
    """feature: [N, F] f32, coords: [V, 2] f32 -> [N, V, C] f32."""
    w1, b1, w2, b2, w3, b3 = params        # weights stored [in, out]
    N, F = feature.shape
    V = coords.shape[0]
    H1 = w1.shape[1]
    H2 = w2.shape[1]
    C = w3.shape[1]

    # Hoist the tile-invariant first layer out of the grid (done once, not per
    # grid step):  concat([feature, coord]) @ W1 + b1
    #            = feature @ W1[:F]  +  (coords @ W1[F:] + b1)
    hp = jax.lax.Precision.HIGHEST
    feat_h1 = jnp.dot(feature, w1[:F], precision=hp)               # [N, H1]
    coord_h1t = (jnp.dot(coords, w1[F:], precision=hp) + b1).T     # [H1, V]

    # 128-aligned coordinate tiles -> unmasked lane-dense stores.
    tv = _pick_tile_v(tile_v, V, N, H1, H2)
    num_tiles = pl.cdiv(V, tv)
    Vp = num_tiles * tv
    if Vp != V:
        coord_h1t = jnp.pad(coord_h1t, ((0, 0), (0, Vp - V)))

    def full(shape):
        nd = len(shape)
        return pl.BlockSpec(shape, lambda j, nd=nd: (0,) * nd)

    # NOTE: on v7x with small V but large N, a second "parallel" grid axis
    # over N would keep both TensorCores busy; omitted here (N is small).
    out_t = pl.pallas_call(
        patch_decoder_kernel,
        out_shape=jax.ShapeDtypeStruct((N, C, Vp), feature.dtype),
        grid=(num_tiles,),
        in_specs=[
            pl.BlockSpec((H1, tv), lambda j: (0, j)),   # coord_h1^T tile (lanes = V)
            full((N, H1)),                              # feat_h1 (tile-invariant)
            full((H2, H1)), full((H2, 1)),              # W2^T, b2
            full((C, H2)), full((C, 1)),                # W3^T, b3
        ],
        # Lane-dense output block: V on lanes, C equals the full (tiny) dim.
        out_specs=pl.BlockSpec((N, C, tv), lambda j: (0, 0, j)),
        compiler_params=pltpu.CompilerParams(
            dimension_semantics=("parallel",),          # disjoint out block per tile
            vmem_limit_bytes=32 * 1024 * 1024,
        ),
    )(coord_h1t, feat_h1, w2.T, b2.reshape(-1, 1), w3.T, b3.reshape(-1, 1))

    out = jnp.transpose(out_t, (0, 2, 1))               # [N, Vp, C] (tiny)
    if Vp != V:
        out = out[:, :V, :]
    return out


def reference(feature, coords, params):
    """Pure-JAX replica of the PyTorch forward (for correctness checking)."""
    w1, b1, w2, b2, w3, b3 = params
    N = feature.shape[0]
    hp = jax.lax.Precision.HIGHEST

    def per_coord(v):
        vec = jnp.broadcast_to(v[None, :], (N, 2))
        x = jnp.concatenate([feature, vec], axis=1)
        x = jnp.maximum(jnp.dot(x, w1, precision=hp) + b1, 0.0)
        x = jnp.maximum(jnp.dot(x, w2, precision=hp) + b2, 0.0)
        return jnp.dot(x, w3, precision=hp) + b3

    out = jax.vmap(per_coord)(coords)                    # [V, N, C]
    return jnp.transpose(out, (1, 0, 2))                 # [N, V, C]


def init_params(key, channel=(32, 3)):
    """Deterministic init mimicking nn.Linear's U(-1/sqrt(fan_in), 1/sqrt(fan_in)).
    Weights stored as [in, out]."""
    dims = [(channel[0] + 2, 32), (32, 16), (16, channel[1])]
    params = []
    for (fan_in, fan_out) in dims:
        key, kw, kb = jax.random.split(key, 3)
        bound = 1.0 / (fan_in ** 0.5)
        w = jax.random.uniform(kw, (fan_in, fan_out), jnp.float32, -bound, bound)
        b = jax.random.uniform(kb, (fan_out,), jnp.float32, -bound, bound)
        params += [w, b]
    return tuple(params)


if __name__ == "__main__":
    key = jax.random.PRNGKey(0)
    k_feat, k_coord, k_param = jax.random.split(key, 3)

    N = 8          # feature.shape[0] (number of patches / nodes)
    channel = (32, 3)
    V = 4          # number of coordinate vectors

    feature = jax.random.normal(k_feat, (N, channel[0]), jnp.float32)
    coords = jax.random.uniform(k_coord, (V, 2), jnp.float32, -1.0, 1.0)
    params = init_params(k_param, channel)

    # Single-tile path (V padded up to one 128-wide lane tile internally).
    out = jax.block_until_ready(patch_decoder(feature, coords, params))
    ref = reference(feature, coords, params)
    assert out.shape == (N, V, channel[1]), out.shape
    assert jnp.allclose(out, ref, atol=1e-5, rtol=1e-5), float(jnp.abs(out - ref).max())

    # Multi-tile path: exercises the parallel grid + padding/slice logic.
    V2 = 300
    coords2 = jax.random.uniform(jax.random.PRNGKey(1), (V2, 2), jnp.float32, -1.0, 1.0)
    out2 = jax.block_until_ready(patch_decoder(feature, coords2, params, tile_v=128))
    ref2 = reference(feature, coords2, params)
    assert out2.shape == (N, V2, channel[1]), out2.shape
    assert jnp.allclose(out2, ref2, atol=1e-5, rtol=1e-5), float(jnp.abs(out2 - ref2).max())

    print("KERNEL_OK")
</pallas_src>

<mosaic_0001>
module attributes {stable_mosaic.version = 11 : i64} {
  func.func @patch_decoder_kernel(%arg0: i32, %arg1: memref<32x128xf32, #tpu.memory_space<vmem>>, %arg2: memref<8x32xf32, #tpu.memory_space<vmem>>, %arg3: memref<16x32xf32, #tpu.memory_space<vmem>>, %arg4: memref<16x1xf32, #tpu.memory_space<vmem>>, %arg5: memref<3x16xf32, #tpu.memory_space<vmem>>, %arg6: memref<3x1xf32, #tpu.memory_space<vmem>>, %arg7: memref<8x3x128xf32, #tpu.memory_space<vmem>>) attributes {dimension_semantics = [#tpu.dimension_semantics<parallel>], iteration_bounds = array<i64: 1>, scalar_prefetch = 0 : i64, scratch_operands = 0 : i64, tpu.core_type = #tpu.core_type<tc>, window_params = [{transform_indices = @transform_0, window_bounds = array<i64: 32, 128>}, {pipeline_mode = #tpu.pipeline_mode<synchronous>, transform_indices = @transform_1, window_bounds = array<i64: 8, 32>}, {pipeline_mode = #tpu.pipeline_mode<synchronous>, transform_indices = @transform_2, window_bounds = array<i64: 16, 32>}, {pipeline_mode = #tpu.pipeline_mode<synchronous>, transform_indices = @transform_3, window_bounds = array<i64: 16, 1>}, {pipeline_mode = #tpu.pipeline_mode<synchronous>, transform_indices = @transform_4, window_bounds = array<i64: 3, 16>}, {pipeline_mode = #tpu.pipeline_mode<synchronous>, transform_indices = @transform_5, window_bounds = array<i64: 3, 1>}, {transform_indices = @transform_6, window_bounds = array<i64: 8, 3, 128>}]} {
    %c0 = arith.constant 0 : index
    %c0_0 = arith.constant 0 : index
    %0 = vector.load %arg2[%c0, %c0_0] : memref<8x32xf32, #tpu.memory_space<vmem>>, vector<8x32xf32>
    %1 = vector.shape_cast %0 : vector<8x32xf32> to vector<8x32x1xf32>
    %c0_1 = arith.constant 0 : index
    %c0_2 = arith.constant 0 : index
    %2 = vector.load %arg1[%c0_1, %c0_2] : memref<32x128xf32, #tpu.memory_space<vmem>>, vector<32x128xf32>
    %3 = vector.shape_cast %2 : vector<32x128xf32> to vector<1x32x128xf32>
    %4 = vector.broadcast %1 : vector<8x32x1xf32> to vector<8x32x128xf32>
    %5 = vector.broadcast %3 : vector<1x32x128xf32> to vector<8x32x128xf32>
    %6 = arith.addf %4, %5 : vector<8x32x128xf32>
    %cst = arith.constant 0.000000e+00 : f32
    %7 = vector.broadcast %cst : f32 to vector<8x32x128xf32>
    %8 = arith.maximumf %6, %7 : vector<8x32x128xf32>
    %c0_3 = arith.constant 0 : index
    %c0_4 = arith.constant 0 : index
    %9 = vector.load %arg3[%c0_3, %c0_4] : memref<16x32xf32, #tpu.memory_space<vmem>>, vector<16x32xf32>
    %10 = vector.shape_cast %9 : vector<16x32xf32> to vector<1x16x32xf32>
    %11 = vector.shape_cast %10 : vector<1x16x32xf32> to vector<1x16x32xf32>
    %12 = vector.broadcast %11 : vector<1x16x32xf32> to vector<8x16x32xf32>
    "tpu.trace_start"() <{level = 10 : i32, message = "nkh,nhv->nkv"}> : () -> ()
    %cst_5 = arith.constant dense<0.000000e+00> : vector<8x16x128xf32>
    %13 = tpu.matmul %12, %8, %cst_5 {dimension_numbers = #tpu.dot_dimension_numbers<[2], [1], [1], [2], [0, 0, 0, 1, 1, 2], [0], [0]>} : vector<8x16x32xf32>, vector<8x32x128xf32>, vector<8x16x128xf32> -> vector<8x16x128xf32>
    "tpu.trace_stop"() : () -> ()
    %c0_6 = arith.constant 0 : index
    %c0_7 = arith.constant 0 : index
    %14 = vector.load %arg4[%c0_6, %c0_7] : memref<16x1xf32, #tpu.memory_space<vmem>>, vector<16x1xf32>
    %15 = vector.shape_cast %14 : vector<16x1xf32> to vector<1x16x1xf32>
    %16 = vector.broadcast %15 : vector<1x16x1xf32> to vector<8x16x128xf32>
    %17 = arith.addf %13, %16 : vector<8x16x128xf32>
    %cst_8 = arith.constant 0.000000e+00 : f32
    %18 = vector.broadcast %cst_8 : f32 to vector<8x16x128xf32>
    %19 = arith.maximumf %17, %18 : vector<8x16x128xf32>
    %c0_9 = arith.constant 0 : index
    %c0_10 = arith.constant 0 : index
    %20 = vector.load %arg5[%c0_9, %c0_10] : memref<3x16xf32, #tpu.memory_space<vmem>>, vector<3x16xf32>
    %21 = vector.shape_cast %20 : vector<3x16xf32> to vector<1x3x16xf32>
    %22 = vector.shape_cast %21 : vector<1x3x16xf32> to vector<1x3x16xf32>
    %23 = vector.broadcast %22 : vector<1x3x16xf32> to vector<8x3x16xf32>
    "tpu.trace_start"() <{level = 10 : i32, message = "nch,nhv->ncv"}> : () -> ()
    %cst_11 = arith.constant dense<0.000000e+00> : vector<8x3x128xf32>
    %24 = tpu.matmul %23, %19, %cst_11 {dimension_numbers = #tpu.dot_dimension_numbers<[2], [1], [1], [2], [0, 0, 0, 1, 1, 2], [0], [0]>} : vector<8x3x16xf32>, vector<8x16x128xf32>, vector<8x3x128xf32> -> vector<8x3x128xf32>
    "tpu.trace_stop"() : () -> ()
    %c0_12 = arith.constant 0 : index
    %c0_13 = arith.constant 0 : index
    %25 = vector.load %arg6[%c0_12, %c0_13] : memref<3x1xf32, #tpu.memory_space<vmem>>, vector<3x1xf32>
    %26 = vector.shape_cast %25 : vector<3x1xf32> to vector<1x3x1xf32>
    %27 = vector.broadcast %26 : vector<1x3x1xf32> to vector<8x3x128xf32>
    %28 = arith.addf %24, %27 : vector<8x3x128xf32>
    %c0_14 = arith.constant 0 : index
    %c0_15 = arith.constant 0 : index
    %c0_16 = arith.constant 0 : index
    %29 = vector.load %arg7[%c0_14, %c0_15, %c0_16] : memref<8x3x128xf32, #tpu.memory_space<vmem>>, vector<8x3x128xf32>
    tpu.vector_store %arg7[%c0_14, %c0_15, %c0_16], %28 {strides = array<i32>} : memref<8x3x128xf32, #tpu.memory_space<vmem>>, vector<8x3x128xf32>,
    return
  }
  func.func @transform_0(%arg0: i32) -> (i32, i32) {
    %c0_i32 = arith.constant 0 : i32
    %c0_i32_0 = arith.constant 0 : i32
    return %c0_i32, %arg0 : i32, i32
  }
  func.func @transform_1(%arg0: i32) -> (i32, i32) {
    %c0_i32 = arith.constant 0 : i32
    %c0_i32_0 = arith.constant 0 : i32
    %c0_i32_1 = arith.constant 0 : i32
    return %c0_i32, %c0_i32_0 : i32, i32
  }
  func.func @transform_2(%arg0: i32) -> (i32, i32) {
    %c0_i32 = arith.constant 0 : i32
    %c0_i32_0 = arith.constant 0 : i32
    %c0_i32_1 = arith.constant 0 : i32
    return %c0_i32, %c0_i32_0 : i32, i32
  }
  func.func @transform_3(%arg0: i32) -> (i32, i32) {
    %c0_i32 = arith.constant 0 : i32
    %c0_i32_0 = arith.constant 0 : i32
    %c0_i32_1 = arith.constant 0 : i32
    return %c0_i32, %c0_i32_0 : i32, i32
  }
  func.func @transform_4(%arg0: i32) -> (i32, i32) {
    %c0_i32 = arith.constant 0 : i32
    %c0_i32_0 = arith.constant 0 : i32
    %c0_i32_1 = arith.constant 0 : i32
    return %c0_i32, %c0_i32_0 : i32, i32
  }
  func.func @transform_5(%arg0: i32) -> (i32, i32) {
    %c0_i32 = arith.constant 0 : i32
    %c0_i32_0 = arith.constant 0 : i32
    %c0_i32_1 = arith.constant 0 : i32
    return %c0_i32, %c0_i32_0 : i32, i32
  }
  func.func @transform_6(%arg0: i32) -> (i32, i32, i32) {
    %c0_i32 = arith.constant 0 : i32
    %c0_i32_0 = arith.constant 0 : i32
    %c0_i32_1 = arith.constant 0 : i32
    return %c0_i32, %c0_i32_0, %arg0 : i32, i32, i32
  }
}

</mosaic_0001>

<bundles_post_ra>
// kernel: tpu_custom_call.1
= control target key start
LH: loop header
LB: loop body
LE: loop exit
PB: predicated region body
PF: predicated region fallthrough
CT: control target
= control target key end

     0   :  { %11 = vsyncpa [#allocation3], 0  ;;  %s1840_s21 = smov [#allocation2]   ;;  %s2077_s0 = inlined_call_operand.hbm [shape: f32[32,128], index: 0, kind: input, shape index: {}]   ;;  %s2078_s1 = inlined_call_operand.vmem [shape: f32[8,32], index: 1, kind: input, shape index: {}]   ;;  %s2079_s2 = inlined_call_operand.vmem [shape: f32[16,32], index: 2, kind: input, shape index: {}]   ;;  %s2080_s3 = inlined_call_operand.vmem [shape: f32[16,1], index: 3, kind: input, shape index: {}]   ;;  %s2081_s4 = inlined_call_operand.vmem [shape: f32[3,16], index: 4, kind: input, shape index: {}]   ;;  %s2082_s5 = inlined_call_operand.vmem [shape: f32[3,1], index: 5, kind: input, shape index: {}]   ;;  %s2083_s6 = inlined_call_operand.vmem [shape: f32[8,3,128], index: 6, kind: output, shape index: {}]  }
   0x1   :  { %s17_s22 = sshll.u32 %s1840_s21, 4  ;;  %s1816_s25 = scalar_lea.hbm %s2077_s0, 512  ;;  %s18_s22 = int_to_ptr.vmem [resolvable:$true] %s17_s22 }
   0x2   :  { %p1817_p0 = scmp.ne.s32.totalorder %s2077_s0, %s1816_s25  ;;  %p1820_p1 = scmp.lt.u32.totalorder %s1816_s25, %s2077_s0 }
   0x4   :  { %p1822_p2 = pnand %p1820_p1, %p1817_p0 }
   0x6   :  { %1825 = shalt.err (!%p1822_p2)
}
   0x7   :  { %s1826_s30 = scalar_lea.vmem %s18_s22, 512  ;;  %p1831_p4 = scmp.lt.s32.totalorder %s18_s22, %s18_s22 }
   0x8   :  { %p1827_p3 = scmp.ne.s32.totalorder %s18_s22, %s1826_s30  ;;  %p1832_p5 = scmp.lt.s32.totalorder %s1826_s30, %s1826_s30 }
   0xa   :  { %p1833_p6 = por %p1832_p5, %p1831_p4 }
   0xc   :  { %p1834_p7 = pnand %p1833_p6, %p1827_p3 }
   0xe   :  { %1837 = shalt.err (!%p1834_p7)
}
   0xf   :  { %s1841_s7 = smov 128   ;;  %s1842_s8 = smov 8  }
  0x10   :  { %23 = dma.hbm_to_vmem [thread:$0]  %s2077_s0, 512, %s18_s22, [#allocation3], %s1841_s7, %s1841_s7, %s1842_s8  }
  0x11   :  { %1838 = dma.done.wait [#allocation3], 512  }
  0x12   :  { %1839 = vsyncadd [#allocation3], 4294966784  ;;  %v38_v0 = vlaneseq  ;;  %v37_v4 = vld [vmem:[%s2078_s1] sm:$0xff]  ;;  %vm272_vm0 = vcmask 261120   ;;  %v1843_v20 = vmov 0   ;;  %v261_v21 = vld [vmem:[%s2080_s3 + $0x8] sm:$0xff] }
  0x13   :  { %v1900_v7 = vld [vmem:[%s2079_s2] sm:$0xff]  ;;  %1815 = vset.pattern.permute.xlu1 %v1843_v20  ;;  %1814 = vset.pattern.permute.xlu0 %v1843_v20  ;;  %v1917_v27 = vld [vmem:[#allocation2 + $0x8] sm:$0xff]  ;;  %v1923_v34 = vld [vmem:[#allocation2 + $0x18] sm:$0xff]  ;;  %vm1845_vm1 = vmmov 0   ;;  %vm902_vm2 = vcmask 130048  }
  0x14   :  { %v39_v1 = vshrl.u32 %v38_v0, 7  ;;  %1583 = vmatprep.mubr.msk.f32.mxu0 %vm272_vm0, %v1900_v7  ;;  %1594 = vmatprep.mubr.msk.f32.mxu1 %vm272_vm0, %v1900_v7  ;;  %v260_v22 = vld [vmem:[%s2080_s3] sm:$0xff]  ;;  %v1925_v35 = vld [vmem:[#allocation2 + $0x10] sm:$0xff]  ;;  %v1934_v57 = vld [vmem:[%s2079_s2 + $0x8] sm:$0xff] }
  0x15   :  { %v896_v23 = vld [vmem:[%s2082_s5] sm:$0x7] }
  0x16   :  { %v59_v2 = vsub.s32 1, %v39_v1  ;;  %v40_v3 = vsub.s32 0, %v39_v1  ;;  %v78_v8 = vsub.s32 2, %v39_v1  ;;  %v97_v10 = vsub.s32 3, %v39_v1  ;;  %v1915_v24 = vld [vmem:[#allocation2] sm:$0xff] }
  0x17   :  { %v116_v12 = vsub.s32 4, %v39_v1  ;;  %v135_v14 = vsub.s32 5, %v39_v1  ;;  %v154_v16 = vsub.s32 6, %v39_v1  ;;  %v173_v18 = vsub.s32 7, %v39_v1 }
  0x18   :  { %v60_v5 = vrot.slane %v37_v4, %v59_v2  ;;  %v41_v6 = vrot.slane %v37_v4, %v40_v3  ;;  %v79_v9 = vrot.slane %v37_v4, %v78_v8  ;;  %v98_v11 = vrot.slane %v37_v4, %v97_v10 }
  0x19   :  { %v117_v13 = vrot.slane %v37_v4, %v116_v12  ;;  %v136_v15 = vrot.slane %v37_v4, %v135_v14  ;;  %v155_v17 = vrot.slane %v37_v4, %v154_v16  ;;  %v174_v19 = vrot.slane %v37_v4, %v173_v18 }
  0x1a   :  { %62 = vbcast.lane.b32.xlu1 %v60_v5, 256  ;;  %43 = vbcast.lane.b32.xlu0 %v41_v6, 256 }
  0x1e   :  { %66 = vbcast.lane.b32.xlu1 %v60_v5, 264  ;;  %47 = vbcast.lane.b32.xlu0 %v41_v6, 264 }
  0x22   :  { %55 = vbcast.lane.b32.xlu1 %v41_v6, 280  ;;  %51 = vbcast.lane.b32.xlu0 %v41_v6, 272 }
  0x26   :  { %74 = vbcast.lane.b32.xlu1 %v60_v5, 280  ;;  %70 = vbcast.lane.b32.xlu0 %v60_v5, 272 }
  0x2a   :  { %85 = vbcast.lane.b32.xlu1 %v79_v9, 264  ;;  %81 = vbcast.lane.b32.xlu0 %v79_v9, 256 }
  0x2e   :  { %104 = vbcast.lane.b32.xlu1 %v98_v11, 264  ;;  %100 = vbcast.lane.b32.xlu0 %v98_v11, 256 }
  0x32   :  { %93 = vbcast.lane.b32.xlu1 %v79_v9, 280  ;;  %89 = vbcast.lane.b32.xlu0 %v79_v9, 272 }
  0x36   :  { %112 = vbcast.lane.b32.xlu1 %v98_v11, 280  ;;  %108 = vbcast.lane.b32.xlu0 %v98_v11, 272 }
  0x3a   :  { %123 = vbcast.lane.b32.xlu1 %v117_v13, 264  ;;  %119 = vbcast.lane.b32.xlu0 %v117_v13, 256 }
  0x3e   :  { %142 = vbcast.lane.b32.xlu1 %v136_v15, 264  ;;  %138 = vbcast.lane.b32.xlu0 %v136_v15, 256 }
  0x42   :  { %131 = vbcast.lane.b32.xlu1 %v117_v13, 280  ;;  %127 = vbcast.lane.b32.xlu0 %v117_v13, 272 }
  0x46   :  { %150 = vbcast.lane.b32.xlu1 %v136_v15, 280  ;;  %146 = vbcast.lane.b32.xlu0 %v136_v15, 272 }
  0x4a   :  { %161 = vbcast.lane.b32.xlu1 %v155_v17, 264  ;;  %157 = vbcast.lane.b32.xlu0 %v155_v17, 256 }
  0x4e   :  { %180 = vbcast.lane.b32.xlu1 %v174_v19, 264  ;;  %176 = vbcast.lane.b32.xlu0 %v174_v19, 256 }
  0x52   :  { %169 = vbcast.lane.b32.xlu1 %v155_v17, 280  ;;  %165 = vbcast.lane.b32.xlu0 %v155_v17, 272 }
  0x56   :  { %188 = vbcast.lane.b32.xlu1 %v174_v19, 280  ;;  %184 = vbcast.lane.b32.xlu0 %v174_v19, 272 }
  0x5a   :  { %269 = vperm.xlu1 %1815, %v261_v21   ;;  %264 = vperm.xlu0 %1814, %v260_v22  }
  0x5e   :  { %899 = vperm.xlu1 %1815, %v896_v23  }
  0x8c   :  { %v63_v25 = vpop.permute.xlu1 %62  ;;  %v44_v26 = vpop.permute.xlu0 %43 }
  0x8d   :  { %v198_v28 = vadd.f32 %v1915_v24, %v63_v25  ;;  %v194_v29 = vadd.f32 %v1915_v24, %v44_v26 }
  0x8f   :  { %v230_v36 = vmax.f32 %v198_v28, 0.0  ;;  %v226_v37 = vmax.f32 %v194_v29, 0.0 }
  0x90   :  { %v67_v30 = vpop.permute.xlu1 %66  ;;  %v48_v31 = vpop.permute.xlu0 %47 }
  0x91   :  { %v199_v32 = vadd.f32 %v1917_v27, %v67_v30  ;;  %v195_v33 = vadd.f32 %v1917_v27, %v48_v31 }
  0x93   :  { %v231_v38 = vmax.f32 %v199_v32, 0.0  ;;  %v227_v39 = vmax.f32 %v195_v33, 0.0 }
  0x94   :  { %v56_v40 = vpop.permute.xlu1 %55  ;;  %v52_v41 = vpop.permute.xlu0 %51 }
  0x95   :  { %v197_v42 = vadd.f32 %v1923_v34, %v56_v40  ;;  %v196_v43 = vadd.f32 %v1925_v35, %v52_v41  ;;  %v1719_v44 = vpack.c.bf16 %v227_v39, %v226_v37  ;;  %v1727_v45 = vpack.c.bf16 %v231_v38, %v230_v36 }
  0x97   :  { %v229_v46 = vmax.f32 %v197_v42, 0.0  ;;  %v228_v47 = vmax.f32 %v196_v43, 0.0  ;;  %1720 = vmatprep.subr.bf16.mxu0 %v1719_v44  ;;  %1728 = vmatprep.subr.bf16.mxu1 %v1727_v45 }
  0x98   :  { %1730 = vmatpush3.bf16.msra.mxu1 %v1727_v45  ;;  %v75_v48 = vpop.permute.xlu1 %74  ;;  %1722 = vmatpush3.bf16.msra.mxu0 %v1719_v44  ;;  %v71_v49 = vpop.permute.xlu0 %70 }
  0x99   :  { %v1723_v50 = vpack.c.bf16 %v229_v46, %v228_v47  ;;  %v201_v51 = vadd.f32 %v1923_v34, %v75_v48  ;;  %v200_v52 = vadd.f32 %v1925_v35, %v71_v49 }
  0x9b   :  { %v233_v53 = vmax.f32 %v201_v51, 0.0  ;;  %v232_v54 = vmax.f32 %v200_v52, 0.0  ;;  %1724 = vmatprep.subr.bf16.mxu0 %v1723_v50 }
  0x9c   :  { %v86_v55 = vpop.permute.xlu1 %85  ;;  %1726 = vmatpush3.bf16.msra.mxu0 %v1723_v50  ;;  %v82_v56 = vpop.permute.xlu0 %81 }
  0x9d   :  { %v1731_v58 = vpack.c.bf16 %v233_v53, %v232_v54  ;;  %v203_v59 = vadd.f32 %v1917_v27, %v86_v55  ;;  %v202_v60 = vadd.f32 %v1915_v24, %v82_v56 }
  0x9f   :  { %v235_v61 = vmax.f32 %v203_v59, 0.0  ;;  %v234_v62 = vmax.f32 %v202_v60, 0.0  ;;  %1584 = vmatmul.mubr.msk.f32.vlgmr.msra.gmra.mrb[0].mxu0 %vm272_vm0, %v1934_v57  ;;  %1732 = vmatprep.subr.bf16.mxu1 %v1731_v58 }
  0xa0   :  { %v105_v63 = vpop.permute.xlu1 %104  ;;  %1734 = vmatpush3.bf16.msra.mxu1 %v1731_v58  ;;  %v101_v0 = vpop.permute.xlu0 %100  ;;  %1605 = vmatprep.mubr.msk.f32.mxu0 %vm272_vm0, %v1900_v7 }
  0xa1   :  { %v1735_v1 = vpack.c.bf16 %v235_v61, %v234_v62  ;;  %v207_v2 = vadd.f32 %v1917_v27, %v105_v63  ;;  %v206_v3 = vadd.f32 %v1915_v24, %v101_v0 }
  0xa3   :  { %v239_v4 = vmax.f32 %v207_v2, 0.0  ;;  %v238_v5 = vmax.f32 %v206_v3, 0.0  ;;  %1595 = vmatmul.mubr.msk.f32.vlgmr.msra.gmra.mrb[0].mxu1 %vm272_vm0, %v1934_v57  ;;  %1736 = vmatprep.subr.bf16.mxu0 %v1735_v1 }
  0xa4   :  { %v94_v6 = vpop.permute.xlu1 %93  ;;  %1738 = vmatpush3.bf16.msra.mxu0 %v1735_v1  ;;  %v90_v8 = vpop.permute.xlu0 %89  ;;  %1616 = vmatprep.mubr.msk.f32.mxu1 %vm272_vm0, %v1900_v7 }
  0xa5   :  { %v1743_v9 = vpack.c.bf16 %v239_v4, %v238_v5  ;;  %v205_v10 = vadd.f32 %v1923_v34, %v94_v6  ;;  %v204_v11 = vadd.f32 %v1925_v35, %v90_v8 }
  0xa7   :  { %v237_v12 = vmax.f32 %v205_v10, 0.0  ;;  %v236_v13 = vmax.f32 %v204_v11, 0.0  ;;  %1744 = vmatprep.subr.bf16.mxu1 %v1743_v9 }
  0xa8   :  { %v113_v14 = vpop.permute.xlu1 %112  ;;  %1746 = vmatpush3.bf16.msra.mxu1 %v1743_v9  ;;  %v109_v15 = vpop.permute.xlu0 %108 }
  0xa9   :  { %v1739_v16 = vpack.c.bf16 %v237_v12, %v236_v13  ;;  %v209_v17 = vadd.f32 %v1923_v34, %v113_v14  ;;  %v208_v18 = vadd.f32 %v1925_v35, %v109_v15 }
  0xab   :  { %v241_v19 = vmax.f32 %v209_v17, 0.0  ;;  %v240_v20 = vmax.f32 %v208_v18, 0.0  ;;  %1740 = vmatprep.subr.bf16.mxu0 %v1739_v16  ;;  %v1844_v17 = vmov 0.0|0.0  }
  0xac   :  { %v124_v21 = vpop.permute.xlu1 %123  ;;  %1742 = vmatpush3.bf16.msra.mxu0 %v1739_v16  ;;  %v120_v22 = vpop.permute.xlu0 %119 }
  0xad   :  { %v1747_v23 = vpack.c.bf16 %v241_v19, %v240_v20  ;;  %v211_v25 = vadd.f32 %v1917_v27, %v124_v21  ;;  %v210_v26 = vadd.f32 %v1915_v24, %v120_v22 }
  0xaf   :  { %v243_v28 = vmax.f32 %v211_v25, 0.0  ;;  %v242_v29 = vmax.f32 %v210_v26, 0.0  ;;  %1606 = vmatmul.mubr.msk.f32.vlgmr.msra.gmra.mrb[2].mxu0 %vm272_vm0, %v1934_v57  ;;  %1748 = vmatprep.subr.bf16.mxu1 %v1747_v23 }
  0xb0   :  { %v143_v30 = vpop.permute.xlu1 %142  ;;  %1750 = vmatpush3.bf16.msra.mxu1 %v1747_v23  ;;  %v139_v31 = vpop.permute.xlu0 %138  ;;  %1627 = vmatprep.mubr.msk.f32.mxu0 %vm272_vm0, %v1900_v7 }
  0xb1   :  { %v1751_v32 = vpack.c.bf16 %v243_v28, %v242_v29  ;;  %v215_v33 = vadd.f32 %v1917_v27, %v143_v30  ;;  %v214_v36 = vadd.f32 %v1915_v24, %v139_v31 }
  0xb3   :  { %v247_v37 = vmax.f32 %v215_v33, 0.0  ;;  %v246_v38 = vmax.f32 %v214_v36, 0.0  ;;  %1617 = vmatmul.mubr.msk.f32.vlgmr.msra.gmra.mrb[2].mxu1 %vm272_vm0, %v1934_v57  ;;  %1752 = vmatprep.subr.bf16.mxu0 %v1751_v32  ;;  %v2005_v33 = vld [vmem:[%s2081_s4] sm:$0x7] }
  0xb4   :  { %v132_v39 = vpop.permute.xlu1 %131  ;;  %1754 = vmatpush3.bf16.msra.mxu0 %v1751_v32  ;;  %v128_v40 = vpop.permute.xlu0 %127  ;;  %1638 = vmatprep.mubr.msk.f32.mxu1 %vm272_vm0, %v1900_v7 }
  0xb5   :  { %v1759_v41 = vpack.c.bf16 %v247_v37, %v246_v38  ;;  %v213_v42 = vadd.f32 %v1923_v34, %v132_v39  ;;  %v212_v43 = vadd.f32 %v1925_v35, %v128_v40 }
  0xb7   :  { %v245_v44 = vmax.f32 %v213_v42, 0.0  ;;  %v244_v45 = vmax.f32 %v212_v43, 0.0  ;;  %1760 = vmatprep.subr.bf16.mxu1 %v1759_v41 }
  0xb8   :  { %v151_v46 = vpop.permute.xlu1 %150  ;;  %1762 = vmatpush3.bf16.msra.mxu1 %v1759_v41  ;;  %v147_v47 = vpop.permute.xlu0 %146 }
  0xb9   :  { %v1755_v48 = vpack.c.bf16 %v245_v44, %v244_v45  ;;  %v217_v49 = vadd.f32 %v1923_v34, %v151_v46  ;;  %v216_v50 = vadd.f32 %v1925_v35, %v147_v47 }
  0xbb   :  { %v249_v51 = vmax.f32 %v217_v49, 0.0  ;;  %v248_v52 = vmax.f32 %v216_v50, 0.0  ;;  %1756 = vmatprep.subr.bf16.mxu0 %v1755_v48 }
  0xbc   :  { %v162_v53 = vpop.permute.xlu1 %161  ;;  %1758 = vmatpush3.bf16.msra.mxu0 %v1755_v48  ;;  %v158_v54 = vpop.permute.xlu0 %157 }
  0xbd   :  { %v1763_v55 = vpack.c.bf16 %v249_v51, %v248_v52  ;;  %v219_v56 = vadd.f32 %v1917_v27, %v162_v53  ;;  %v218_v58 = vadd.f32 %v1915_v24, %v158_v54 }
  0xbf   :  { %v251_v59 = vmax.f32 %v219_v56, 0.0  ;;  %v250_v60 = vmax.f32 %v218_v58, 0.0  ;;  %1628 = vmatmul.mubr.msk.f32.vlgmr.msra.gmra.mrb[4].mxu0 %vm272_vm0, %v1934_v57  ;;  %1764 = vmatprep.subr.bf16.mxu1 %v1763_v55 }
  0xc0   :  { %v181_v61 = vpop.permute.xlu1 %180  ;;  %1766 = vmatpush3.bf16.msra.mxu1 %v1763_v55  ;;  %v177_v62 = vpop.permute.xlu0 %176  ;;  %1649 = vmatprep.mubr.msk.f32.mxu0 %vm272_vm0, %v1900_v7 }
  0xc1   :  { %v1767_v63 = vpack.c.bf16 %v251_v59, %v250_v60  ;;  %v223_v0 = vadd.f32 %v1917_v27, %v181_v61  ;;  %v222_v1 = vadd.f32 %v1915_v24, %v177_v62 }
  0xc3   :  { %v255_v2 = vmax.f32 %v223_v0, 0.0  ;;  %v254_v3 = vmax.f32 %v222_v1, 0.0  ;;  %1639 = vmatmul.mubr.msk.f32.vlgmr.msra.gmra.mrb[4].mxu1 %vm272_vm0, %v1934_v57  ;;  %1768 = vmatprep.subr.bf16.mxu0 %v1767_v63 }
  0xc4   :  { %v170_v4 = vpop.permute.xlu1 %169  ;;  %1770 = vmatpush3.bf16.msra.mxu0 %v1767_v63  ;;  %v166_v5 = vpop.permute.xlu0 %165  ;;  %1660 = vmatprep.mubr.msk.f32.mxu1 %vm272_vm0, %v1900_v7 }
  0xc5   :  { %v1775_v6 = vpack.c.bf16 %v255_v2, %v254_v3  ;;  %v221_v8 = vadd.f32 %v1923_v34, %v170_v4  ;;  %v220_v9 = vadd.f32 %v1925_v35, %v166_v5 }
  0xc7   :  { %v253_v27 = vmax.f32 %v221_v8, 0.0  ;;  %v252_v10 = vmax.f32 %v220_v9, 0.0  ;;  %1776 = vmatprep.subr.bf16.mxu1 %v1775_v6 }
  0xc8   :  { %v189_v24 = vpop.permute.xlu1 %188  ;;  %1778 = vmatpush3.bf16.msra.mxu1 %v1775_v6  ;;  %v185_v11 = vpop.permute.xlu0 %184 }
  0xc9   :  { %v1771_v12 = vpack.c.bf16 %v253_v27, %v252_v10  ;;  %v225_v13 = vadd.f32 %v1923_v34, %v189_v24  ;;  %v224_v14 = vadd.f32 %v1925_v35, %v185_v11  ;;  %v1846_v34 = vmov 0.0  }
  0xcb   :  { %v257_v15 = vmax.f32 %v225_v13, 0.0  ;;  %v256_v16 = vmax.f32 %v224_v14, 0.0  ;;  %1772 = vmatprep.subr.bf16.mxu0 %v1771_v12 }
  0xcc   :  { %1774 = vmatpush3.bf16.msra.mxu0 %v1771_v12 }
  0xcd   :  { %v1779_v7 = vpack.c.bf16 %v257_v15, %v256_v16  ;;  %1783 = vmatprep.subr.bf16.mxu0 %v1844_v17 }
  0xcf   :  { %1650 = vmatmul.mubr.msk.f32.vlgmr.msra.gmra.mrb[6].mxu0 %vm272_vm0, %v1934_v57  ;;  %1780 = vmatprep.subr.bf16.mxu1 %v1779_v7 }
  0xd0   :  { %1782 = vmatpush3.bf16.msra.mxu1 %v1779_v7  ;;  %1667 = vmatprep.mubr.msk.f32.mxu0 %vm1845_vm1, %v1846_v34 }
  0xd1   :  { %1786 = vmatprep.subr.bf16.mxu1 %v1844_v17 }
  0xd3   :  { %1661 = vmatmul.mubr.msk.f32.vlgmr.msra.gmra.mrb[6].mxu1 %vm272_vm0, %v1934_v57 }
  0xd4   :  { %1674 = vmatprep.mubr.msk.f32.mxu1 %vm1845_vm1, %v1846_v34 }
  0xd9   :  { %v1994_v35 = vpop.permute.xlu1 %269  ;;  %v1996_v18 = vpop.permute.xlu0 %264 }
  0xdd   :  { %v900_v15 = vpop.permute.xlu1 %899 }
 0x172   :  { %v1585_v19 = vpop.f32.mrb[0].mxu0 }
 0x173   :  { %v345_v20 = vpop.f32.mrb[1].mxu0  ;;  %v351_v57 = vadd.f32 %v1585_v19, %v1994_v35 }
 0x174   :  { %v346_v21 = vadd.f32 %v345_v20, %v1996_v18 }
 0x175   :  { %v880_v22 = vmax.f32 %v351_v57, 0.0 }
 0x176   :  { %v1596_v23 = vpop.f32.mrb[0].mxu1  ;;  %v879_v25 = vmax.f32 %v346_v21, 0.0 }
 0x177   :  { %v426_v26 = vadd.f32 %v1596_v23, %v1994_v35  ;;  %v420_v28 = vpop.f32.mrb[1].mxu1 }
 0x178   :  { %v421_v29 = vadd.f32 %v420_v28, %v1996_v18  ;;  %v1784_v30 = vpack.c.bf16 %v880_v22, %v879_v25 }
 0x179   :  { %v882_v31 = vmax.f32 %v426_v26, 0.0 }
 0x17a   :  { %v881_v32 = vmax.f32 %v421_v29, 0.0  ;;  %1785 = vmatpush3.bf16.msra.mxu0 %v1784_v30 }
 0x17b   :  { %1789 = vmatprep.subr.bf16.mxu0 %v1844_v17 }
 0x17c   :  { %v1787_v36 = vpack.c.bf16 %v882_v31, %v881_v32 }
 0x17d   :  { %1668 = vmatmul.mubr.msk.f32.vlgmr.msra.gmra.mrb[8].mxu0 %vm902_vm2, %v2005_v33 }
 0x17e   :  { %1788 = vmatpush3.bf16.msra.mxu1 %v1787_v36  ;;  %1681 = vmatprep.mubr.msk.f32.mxu0 %vm1845_vm1, %v1846_v34 }
 0x17f   :  { %1792 = vmatprep.subr.bf16.mxu1 %v1844_v17 }
 0x181   :  { %1675 = vmatmul.mubr.msk.f32.vlgmr.msra.gmra.mrb[8].mxu1 %vm902_vm2, %v2005_v33 }
 0x182   :  { %v1607_v37 = vpop.f32.mrb[2].mxu0  ;;  %1688 = vmatprep.mubr.msk.f32.mxu1 %vm1845_vm1, %v1846_v34 }
 0x183   :  { %v501_v38 = vadd.f32 %v1607_v37, %v1994_v35  ;;  %v495_v39 = vpop.f32.mrb[3].mxu0 }
 0x184   :  { %v496_v40 = vadd.f32 %v495_v39, %v1996_v18 }
 0x185   :  { %v884_v41 = vmax.f32 %v501_v38, 0.0 }
 0x186   :  { %v883_v42 = vmax.f32 %v496_v40, 0.0  ;;  %v1618_v43 = vpop.f32.mrb[2].mxu1 }
 0x187   :  { %v576_v44 = vadd.f32 %v1618_v43, %v1994_v35  ;;  %v570_v45 = vpop.f32.mrb[3].mxu1 }
 0x188   :  { %v1790_v46 = vpack.c.bf16 %v884_v41, %v883_v42  ;;  %v571_v47 = vadd.f32 %v570_v45, %v1996_v18 }
 0x189   :  { %v886_v48 = vmax.f32 %v576_v44, 0.0 }
 0x18a   :  { %v885_v49 = vmax.f32 %v571_v47, 0.0  ;;  %1791 = vmatpush3.bf16.msra.mxu0 %v1790_v46 }
 0x18b   :  { %1795 = vmatprep.subr.bf16.mxu0 %v1844_v17 }
 0x18c   :  { %v1793_v50 = vpack.c.bf16 %v886_v48, %v885_v49 }
 0x18d   :  { %1682 = vmatmul.mubr.msk.f32.vlgmr.msra.gmra.mrb[10].mxu0 %vm902_vm2, %v2005_v33 }
 0x18e   :  { %1794 = vmatpush3.bf16.msra.mxu1 %v1793_v50  ;;  %1695 = vmatprep.mubr.msk.f32.mxu0 %vm1845_vm1, %v1846_v34 }
 0x18f   :  { %1798 = vmatprep.subr.bf16.mxu1 %v1844_v17 }
 0x191   :  { %1689 = vmatmul.mubr.msk.f32.vlgmr.msra.gmra.mrb[10].mxu1 %vm902_vm2, %v2005_v33 }
 0x192   :  { %v1629_v51 = vpop.f32.mrb[4].mxu0  ;;  %1702 = vmatprep.mubr.msk.f32.mxu1 %vm1845_vm1, %v1846_v34 }
 0x193   :  { %v651_v52 = vadd.f32 %v1629_v51, %v1994_v35  ;;  %v645_v53 = vpop.f32.mrb[5].mxu0 }
 0x194   :  { %v646_v54 = vadd.f32 %v645_v53, %v1996_v18 }
 0x195   :  { %v888_v55 = vmax.f32 %v651_v52, 0.0 }
 0x196   :  { %v887_v56 = vmax.f32 %v646_v54, 0.0  ;;  %v1640_v58 = vpop.f32.mrb[4].mxu1 }
 0x197   :  { %v726_v59 = vadd.f32 %v1640_v58, %v1994_v35  ;;  %v720_v60 = vpop.f32.mrb[5].mxu1 }
 0x198   :  { %v1796_v61 = vpack.c.bf16 %v888_v55, %v887_v56  ;;  %v721_v62 = vadd.f32 %v720_v60, %v1996_v18 }
 0x199   :  { %v890_v63 = vmax.f32 %v726_v59, 0.0 }
 0x19a   :  { %v889_v0 = vmax.f32 %v721_v62, 0.0  ;;  %1797 = vmatpush3.bf16.msra.mxu0 %v1796_v61 }
 0x19b   :  { %1801 = vmatprep.subr.bf16.mxu0 %v1844_v17 }
 0x19c   :  { %v1799_v1 = vpack.c.bf16 %v890_v63, %v889_v0 }
 0x19d   :  { %1696 = vmatmul.mubr.msk.f32.vlgmr.msra.gmra.mrb[12].mxu0 %vm902_vm2, %v2005_v33 }
 0x19e   :  { %1800 = vmatpush3.bf16.msra.mxu1 %v1799_v1  ;;  %1709 = vmatprep.mubr.msk.f32.mxu0 %vm1845_vm1, %v1846_v34 }
 0x19f   :  { %1804 = vmatprep.subr.bf16.mxu1 %v1844_v17 }
 0x1a1   :  { %1703 = vmatmul.mubr.msk.f32.vlgmr.msra.gmra.mrb[12].mxu1 %vm902_vm2, %v2005_v33 }
 0x1a2   :  { %v1651_v2 = vpop.f32.mrb[6].mxu0  ;;  %1716 = vmatprep.mubr.msk.f32.mxu1 %vm1845_vm1, %v1846_v34 }
 0x1a3   :  { %v801_v3 = vadd.f32 %v1651_v2, %v1994_v35  ;;  %v795_v4 = vpop.f32.mrb[7].mxu0 }
 0x1a4   :  { %v796_v5 = vadd.f32 %v795_v4, %v1996_v18 }
 0x1a5   :  { %v892_v6 = vmax.f32 %v801_v3, 0.0 }
 0x1a6   :  { %v891_v8 = vmax.f32 %v796_v5, 0.0  ;;  %v1662_v9 = vpop.f32.mrb[6].mxu1 }
 0x1a7   :  { %v876_v27 = vadd.f32 %v1662_v9, %v1994_v35  ;;  %v870_v10 = vpop.f32.mrb[7].mxu1 }
 0x1a8   :  { %v1802_v24 = vpack.c.bf16 %v892_v6, %v891_v8  ;;  %v871_v11 = vadd.f32 %v870_v10, %v1996_v18 }
 0x1a9   :  { %v894_v12 = vmax.f32 %v876_v27, 0.0 }
 0x1aa   :  { %v893_v13 = vmax.f32 %v871_v11, 0.0  ;;  %1803 = vmatpush3.bf16.msra.mxu0 %v1802_v24 }
 0x1ac   :  { %v1805_v14 = vpack.c.bf16 %v894_v12, %v893_v13 }
 0x1ad   :  { %1710 = vmatmul.mubr.msk.f32.vlgmr.msra.gmra.mrb[14].mxu0 %vm902_vm2, %v2005_v33 }
 0x1ae   :  { %1806 = vmatpush3.bf16.msra.mxu1 %v1805_v14 }
 0x1b1   :  { %1717 = vmatmul.mubr.msk.f32.vlgmr.msra.gmra.mrb[14].mxu1 %vm902_vm2, %v2005_v33 }
 0x250   :  { %v972_v16 = vpop.f32.mrb[8].mxu0 }
 0x251   :  { %v973_v7 = vadd.f32 %v972_v16, %v900_v15  ;;  %v1669_v17 = vpop.f32.mrb[9].mxu0 }
 0x253   :  { %1466 = vst [vmem:[%s2083_s6] sm:$0x7] %v973_v7 }
 0x254   :  { %v1042_v34 = vpop.f32.mrb[8].mxu1 }
 0x255   :  { %v1043_v35 = vadd.f32 %v1042_v34, %v900_v15  ;;  %v1676_v18 = vpop.f32.mrb[9].mxu1 }
 0x257   :  { %1467 = vst [vmem:[%s2083_s6 + $0x4] sm:$0x7] %v1043_v35 }
 0x260   :  { %v1112_v19 = vpop.f32.mrb[10].mxu0 }
 0x261   :  { %v1113_v20 = vadd.f32 %v1112_v19, %v900_v15  ;;  %v1683_v57 = vpop.f32.mrb[11].mxu0 }
 0x263   :  { %1468 = vst [vmem:[%s2083_s6 + $0x8] sm:$0x7] %v1113_v20 }
 0x264   :  { %v1182_v21 = vpop.f32.mrb[10].mxu1 }
 0x265   :  { %v1183_v22 = vadd.f32 %v1182_v21, %v900_v15  ;;  %v1690_v23 = vpop.f32.mrb[11].mxu1 }
 0x267   :  { %1469 = vst [vmem:[%s2083_s6 + $0xc] sm:$0x7] %v1183_v22 }
 0x270   :  { %v1252_v25 = vpop.f32.mrb[12].mxu0 }
 0x271   :  { %v1253_v26 = vadd.f32 %v1252_v25, %v900_v15  ;;  %v1697_v28 = vpop.f32.mrb[13].mxu0 }
 0x273   :  { %1470 = vst [vmem:[%s2083_s6 + $0x10] sm:$0x7] %v1253_v26 }
 0x274   :  { %v1322_v29 = vpop.f32.mrb[12].mxu1 }
 0x275   :  { %v1323_v30 = vadd.f32 %v1322_v29, %v900_v15  ;;  %v1704_v31 = vpop.f32.mrb[13].mxu1 }
 0x277   :  { %1471 = vst [vmem:[%s2083_s6 + $0x14] sm:$0x7] %v1323_v30 }
 0x280   :  { %v1392_v32 = vpop.f32.mrb[14].mxu0 }
 0x281   :  { %v1393_v33 = vadd.f32 %v1392_v32, %v900_v15  ;;  %v1711_v36 = vpop.f32.mrb[15].mxu0 }
 0x283   :  { %1472 = vst [vmem:[%s2083_s6 + $0x18] sm:$0x7] %v1393_v33 }
 0x284   :  { %v1462_v37 = vpop.f32.mrb[14].mxu1 }
 0x285   :  { %v1463_v38 = vadd.f32 %v1462_v37, %v900_v15  ;;  %v1718_v39 = vpop.f32.mrb[15].mxu1 }
 0x287   :  { %1473 = vst [vmem:[%s2083_s6 + $0x1c] sm:$0x7] %v1463_v38 }
 0x288   :  { %1478 = vsyncpa [#allocation3], 1 }

</bundles_post_ra>
